<compile_context>
chip_gen: v7x
topology: tpu7x:2x2x1
jax: 0.10.0
libtpu: 0.0.40
codegen_flags: <defaults>
</compile_context>

<pallas_src>
import functools

import jax
import jax.numpy as jnp
from jax.experimental import pallas as pl
from jax.experimental.pallas import tpu as pltpu


def _round_up(x, m):
    return ((x + m - 1) // m) * m


def _gelu_tanh(x):
    # PyTorch nn.GELU(approximate='tanh'):
    # 0.5 * x * (1 + tanh(sqrt(2/pi) * (x + 0.044715 * x^3)))
    c = 0.7978845608028654  # sqrt(2/pi)
    return 0.5 * x * (1.0 + jnp.tanh(c * (x + 0.044715 * x * x * x)))


def _mlp_kernel(x_ref, w1_ref, b1_ref, w2_ref, b2_ref, o_ref, acc_ref):
    """One (token-tile, hidden-tile) grid step.

    x_ref  : (tm, D_in)      - resident across the hidden axis
    w1_ref : (D_in, th)      - fc1 weight tile
    b1_ref : (1, th)         - fc1 bias tile
    w2_ref : (th, D_out)     - fc2 weight tile
    b2_ref : (1, D_out)      - fc2 bias (constant)
    o_ref  : (tm, D_out)     - output tile (written on last hidden step)
    acc_ref: (tm, D_out) f32 - fc2 partial-sum accumulator
    """
    h_idx = pl.program_id(1)

    @pl.when(h_idx == 0)
    def _():
        acc_ref[...] = jnp.zeros_like(acc_ref)

    # fc1 tile on the MXU: native-dtype operands, f32 accumulation.
    h = jnp.dot(x_ref[...], w1_ref[...], preferred_element_type=jnp.float32)
    h = h + b1_ref[...].astype(jnp.float32)
    h = _gelu_tanh(h)
    # TODO(synk): dropout(p=0.1) is identity in eval mode; train-mode masking
    # would use pltpu.prng_seed + pltpu.prng_random_bits with 1/(1-p) scaling.

    # Partial fc2 contribution of this hidden tile, accumulated in f32.
    acc_ref[...] += jnp.dot(h.astype(w2_ref.dtype), w2_ref[...],
                            preferred_element_type=jnp.float32)

    @pl.when(h_idx == pl.num_programs(1) - 1)
    def _():
        o_ref[...] = (acc_ref[...] +
                      b2_ref[...].astype(jnp.float32)).astype(o_ref.dtype)


@functools.partial(jax.jit, static_argnames=("tm", "th"))
def mlp_forward(x, w1, b1, w2, b2, *, tm=256, th=512):
    """x: [M, D_in]; w1: [D_in, H]; b1: [H]; w2: [H, D_out]; b2: [D_out]."""
    M, D_in = x.shape
    H = w1.shape[1]
    D_out = w2.shape[1]

    # Effective tiles: clamp to the (aligned) problem size for small inputs.
    tm_eff = min(tm, _round_up(M, 8))        # sublane-aligned row tile
    th_eff = min(th, _round_up(H, 128))      # lane-aligned hidden tile

    # Padded, lane/sublane-aligned dims (zero padding is exact for this MLP).
    Mp = _round_up(M, tm_eff)
    Dinp = _round_up(D_in, 128)
    Hp = _round_up(H, th_eff)
    Doutp = _round_up(D_out, 128)

    xp = jnp.pad(x, ((0, Mp - M), (0, Dinp - D_in)))
    w1p = jnp.pad(w1, ((0, Dinp - D_in), (0, Hp - H)))
    b1p = jnp.pad(b1, (0, Hp - H)).reshape(1, Hp)
    w2p = jnp.pad(w2, ((0, Hp - H), (0, Doutp - D_out)))
    b2p = jnp.pad(b2, (0, Doutp - D_out)).reshape(1, Doutp)

    grid = (Mp // tm_eff, Hp // th_eff)

    item = jnp.dtype(x.dtype).itemsize
    cost = pl.CostEstimate(
        flops=2 * M * (D_in * H + H * D_out),
        transcendentals=M * H,
        bytes_accessed=item * (M * D_in + D_in * H + H
                               + H * D_out + D_out + M * D_out),
    )

    # Rough per-step VMEM footprint (double-buffered inputs/outputs + acc);
    # give it headroom but keep it modest so it also behaves on v7x (64 MiB).
    vmem_est = (
        2 * item * (tm_eff * Dinp + Dinp * th_eff + th_eff
                    + th_eff * Doutp + tm_eff * Doutp)
        + item * Doutp
        + 4 * tm_eff * Doutp                 # f32 accumulator scratch
    )
    vmem_limit = int(min(max(2 * vmem_est + (8 << 20), 32 << 20), 100 << 20))

    out = pl.pallas_call(
        _mlp_kernel,
        out_shape=jax.ShapeDtypeStruct((Mp, Doutp), x.dtype),
        grid_spec=pltpu.PrefetchScalarGridSpec(
            num_scalar_prefetch=0,
            grid=grid,
            in_specs=[
                pl.BlockSpec((tm_eff, Dinp), lambda i, h: (i, 0)),    # x tile
                pl.BlockSpec((Dinp, th_eff), lambda i, h: (0, h)),    # W1 tile
                pl.BlockSpec((1, th_eff), lambda i, h: (0, h)),       # b1 tile
                pl.BlockSpec((th_eff, Doutp), lambda i, h: (h, 0)),   # W2 tile
                pl.BlockSpec((1, Doutp), lambda i, h: (0, 0)),        # b2
            ],
            out_specs=pl.BlockSpec((tm_eff, Doutp), lambda i, h: (i, 0)),
            scratch_shapes=[pltpu.VMEM((tm_eff, Doutp), jnp.float32)],
        ),
        compiler_params=pltpu.CompilerParams(
            dimension_semantics=("parallel", "arbitrary"),
            vmem_limit_bytes=vmem_limit,
        ),
        cost_estimate=cost,
    )(xp, w1p, b1p, w2p, b2p)

    return out[:M, :D_out]


def _reference(x, w1, b1, w2, b2):
    h = _gelu_tanh(x @ w1 + b1)
    return h @ w2 + b2


if __name__ == "__main__":
    # Small shapes implied by the module: batch=2, seq=8, in=32, hidden=64, out=32.
    B, S, D_in, H, D_out = 2, 8, 32, 64, 32
    key = jax.random.PRNGKey(0)
    kx, k1, k2, k3, k4 = jax.random.split(key, 5)

    x = jax.random.normal(kx, (B, S, D_in), dtype=jnp.float32)
    # Deterministic "Linear" params (stored transposed vs. torch: [in, out]).
    w1 = jax.random.normal(k1, (D_in, H), dtype=jnp.float32) * 0.02
    b1 = jax.random.normal(k2, (H,), dtype=jnp.float32) * 0.01
    w2 = jax.random.normal(k3, (H, D_out), dtype=jnp.float32) * 0.02
    b2 = jax.random.normal(k4, (D_out,), dtype=jnp.float32) * 0.01

    x2d = x.reshape(B * S, D_in)  # flatten leading dims like nn.Linear does
    out = mlp_forward(x2d, w1, b1, w2, b2)
    out = jax.block_until_ready(out).reshape(B, S, D_out)

    ref = _reference(x2d, w1, b1, w2, b2).reshape(B, S, D_out)
    assert out.shape == (B, S, D_out)
    assert jnp.allclose(out, ref, atol=1e-5, rtol=1e-5), "mismatch vs reference"
    print("KERNEL_OK")
</pallas_src>

<mosaic_0001>
module attributes {stable_mosaic.version = 11 : i64} {
  func.func @_mlp_kernel(%arg0: i32, %arg1: i32, %arg2: memref<16x128xf32, #tpu.memory_space<vmem>>, %arg3: memref<128x128xf32, #tpu.memory_space<vmem>>, %arg4: memref<1x128xf32, #tpu.memory_space<vmem>>, %arg5: memref<128x128xf32, #tpu.memory_space<vmem>>, %arg6: memref<1x128xf32, #tpu.memory_space<vmem>>, %arg7: memref<16x128xf32, #tpu.memory_space<vmem>>, %arg8: memref<16x128xf32, #tpu.memory_space<vmem>>) attributes {dimension_semantics = [#tpu.dimension_semantics<parallel>, #tpu.dimension_semantics<arbitrary>], iteration_bounds = array<i64: 1, 1>, scalar_prefetch = 0 : i64, scratch_operands = 1 : i64, tpu.core_type = #tpu.core_type<tc>, window_params = [{transform_indices = @transform_0, window_bounds = array<i64: 16, 128>}, {transform_indices = @transform_1, window_bounds = array<i64: 128, 128>}, {transform_indices = @transform_2, window_bounds = array<i64: 1, 128>}, {transform_indices = @transform_3, window_bounds = array<i64: 128, 128>}, {pipeline_mode = #tpu.pipeline_mode<synchronous>, transform_indices = @transform_4, window_bounds = array<i64: 1, 128>}, {transform_indices = @transform_5, window_bounds = array<i64: 16, 128>}]} {
    %c0_i32 = arith.constant 0 : i32
    %0 = arith.cmpi eq, %arg1, %c0_i32 : i32
    %1 = arith.extui %0 : i1 to i32
    %c0_i32_0 = arith.constant 0 : i32
    %2 = arith.cmpi ne, %1, %c0_i32_0 : i32
    scf.if %2 {
      %cst_19 = arith.constant 0.000000e+00 : f32
      %30 = vector.broadcast %cst_19 : f32 to vector<16x128xf32>
      %c0_20 = arith.constant 0 : index
      %c0_21 = arith.constant 0 : index
      %31 = vector.load %arg8[%c0_20, %c0_21] : memref<16x128xf32, #tpu.memory_space<vmem>>, vector<16x128xf32>
      tpu.vector_store %arg8[%c0_20, %c0_21], %30 {strides = array<i32>} : memref<16x128xf32, #tpu.memory_space<vmem>>, vector<16x128xf32>,
    } else {
    }
    %c0 = arith.constant 0 : index
    %c0_1 = arith.constant 0 : index
    %3 = vector.load %arg2[%c0, %c0_1] : memref<16x128xf32, #tpu.memory_space<vmem>>, vector<16x128xf32>
    %c0_2 = arith.constant 0 : index
    %c0_3 = arith.constant 0 : index
    %4 = vector.load %arg3[%c0_2, %c0_3] : memref<128x128xf32, #tpu.memory_space<vmem>>, vector<128x128xf32>
    %cst = arith.constant dense<0.000000e+00> : vector<16x128xf32>
    %5 = tpu.matmul %3, %4, %cst {dimension_numbers = #tpu.dot_dimension_numbers<[1], [0], [0], [1], [0, 0, 1, 1], [], []>} : vector<16x128xf32>, vector<128x128xf32>, vector<16x128xf32> -> vector<16x128xf32>
    %c0_4 = arith.constant 0 : index
    %c0_5 = arith.constant 0 : index
    %6 = vector.load %arg4[%c0_4, %c0_5] : memref<1x128xf32, #tpu.memory_space<vmem>>, vector<1x128xf32>
    %7 = vector.broadcast %6 : vector<1x128xf32> to vector<16x128xf32>
    %8 = arith.addf %5, %7 : vector<16x128xf32>
    %cst_6 = arith.constant 5.000000e-01 : f32
    %9 = vector.broadcast %cst_6 : f32 to vector<16x128xf32>
    %10 = arith.mulf %9, %8 : vector<16x128xf32>
    %cst_7 = arith.constant 4.471500e-02 : f32
    %11 = vector.broadcast %cst_7 : f32 to vector<16x128xf32>
    %12 = arith.mulf %11, %8 : vector<16x128xf32>
    %13 = arith.mulf %12, %8 : vector<16x128xf32>
    %14 = arith.mulf %13, %8 : vector<16x128xf32>
    %15 = arith.addf %8, %14 : vector<16x128xf32>
    %cst_8 = arith.constant 0.797884583 : f32
    %16 = vector.broadcast %cst_8 : f32 to vector<16x128xf32>
    %17 = arith.mulf %16, %15 : vector<16x128xf32>
    %18 = math.tanh %17 : vector<16x128xf32>
    %cst_9 = arith.constant 1.000000e+00 : f32
    %19 = vector.broadcast %cst_9 : f32 to vector<16x128xf32>
    %20 = arith.addf %19, %18 : vector<16x128xf32>
    %21 = arith.mulf %10, %20 : vector<16x128xf32>
    %c0_10 = arith.constant 0 : index
    %c0_11 = arith.constant 0 : index
    %22 = vector.load %arg8[%c0_10, %c0_11] : memref<16x128xf32, #tpu.memory_space<vmem>>, vector<16x128xf32>
    %c0_12 = arith.constant 0 : index
    %c0_13 = arith.constant 0 : index
    %23 = vector.load %arg5[%c0_12, %c0_13] : memref<128x128xf32, #tpu.memory_space<vmem>>, vector<128x128xf32>
    %cst_14 = arith.constant dense<0.000000e+00> : vector<16x128xf32>
    %24 = tpu.matmul %21, %23, %cst_14 {dimension_numbers = #tpu.dot_dimension_numbers<[1], [0], [0], [1], [0, 0, 1, 1], [], []>} : vector<16x128xf32>, vector<128x128xf32>, vector<16x128xf32> -> vector<16x128xf32>
    %25 = arith.addf %22, %24 : vector<16x128xf32>
    %c0_15 = arith.constant 0 : index
    %c0_16 = arith.constant 0 : index
    %26 = vector.load %arg8[%c0_15, %c0_16] : memref<16x128xf32, #tpu.memory_space<vmem>>, vector<16x128xf32>
    tpu.vector_store %arg8[%c0_15, %c0_16], %25 {strides = array<i32>} : memref<16x128xf32, #tpu.memory_space<vmem>>, vector<16x128xf32>,
    %c0_i32_17 = arith.constant 0 : i32
    %27 = arith.cmpi eq, %arg1, %c0_i32_17 : i32
    %28 = arith.extui %27 : i1 to i32
    %c0_i32_18 = arith.constant 0 : i32
    %29 = arith.cmpi ne, %28, %c0_i32_18 : i32
    scf.if %29 {
      %c0_19 = arith.constant 0 : index
      %c0_20 = arith.constant 0 : index
      %30 = vector.load %arg8[%c0_19, %c0_20] : memref<16x128xf32, #tpu.memory_space<vmem>>, vector<16x128xf32>
      %c0_21 = arith.constant 0 : index
      %c0_22 = arith.constant 0 : index
      %31 = vector.load %arg6[%c0_21, %c0_22] : memref<1x128xf32, #tpu.memory_space<vmem>>, vector<1x128xf32>
      %32 = vector.broadcast %31 : vector<1x128xf32> to vector<16x128xf32>
      %33 = arith.addf %30, %32 : vector<16x128xf32>
      %c0_23 = arith.constant 0 : index
      %c0_24 = arith.constant 0 : index
      %34 = vector.load %arg7[%c0_23, %c0_24] : memref<16x128xf32, #tpu.memory_space<vmem>>, vector<16x128xf32>
      tpu.vector_store %arg7[%c0_23, %c0_24], %33 {strides = array<i32>} : memref<16x128xf32, #tpu.memory_space<vmem>>, vector<16x128xf32>,
    } else {
    }
    return
  }
  func.func @transform_0(%arg0: i32, %arg1: i32) -> (i32, i32) {
    %c0_i32 = arith.constant 0 : i32
    %c0_i32_0 = arith.constant 0 : i32
    return %arg0, %c0_i32 : i32, i32
  }
  func.func @transform_1(%arg0: i32, %arg1: i32) -> (i32, i32) {
    %c0_i32 = arith.constant 0 : i32
    %c0_i32_0 = arith.constant 0 : i32
    return %c0_i32, %arg1 : i32, i32
  }
  func.func @transform_2(%arg0: i32, %arg1: i32) -> (i32, i32) {
    %c0_i32 = arith.constant 0 : i32
    %c0_i32_0 = arith.constant 0 : i32
    return %c0_i32, %arg1 : i32, i32
  }
  func.func @transform_3(%arg0: i32, %arg1: i32) -> (i32, i32) {
    %c0_i32 = arith.constant 0 : i32
    %c0_i32_0 = arith.constant 0 : i32
    return %arg1, %c0_i32 : i32, i32
  }
  func.func @transform_4(%arg0: i32, %arg1: i32) -> (i32, i32) {
    %c0_i32 = arith.constant 0 : i32
    %c0_i32_0 = arith.constant 0 : i32
    %c0_i32_1 = arith.constant 0 : i32
    return %c0_i32, %c0_i32_0 : i32, i32
  }
  func.func @transform_5(%arg0: i32, %arg1: i32) -> (i32, i32) {
    %c0_i32 = arith.constant 0 : i32
    %c0_i32_0 = arith.constant 0 : i32
    return %arg0, %c0_i32 : i32, i32
  }
}

</mosaic_0001>

<bundles_post_ra>
// kernel: mlp_forward.1
= control target key start
LH: loop header
LB: loop body
LE: loop exit
PB: predicated region body
PF: predicated region fallthrough
CT: control target
= control target key end

     0   :  { %s630_s0 = inlined_call_operand.vmem [shape: f32[16,128], index: 0, kind: input, shape index: {}]   ;;  %s631_s1 = inlined_call_operand.vmem [shape: f32[128,128], index: 1, kind: input, shape index: {}]   ;;  %s632_s2 = inlined_call_operand.vmem [shape: f32[1,128], index: 2, kind: input, shape index: {}]   ;;  %s633_s3 = inlined_call_operand.vmem [shape: f32[128,128], index: 3, kind: input, shape index: {}]   ;;  %s634_s4 = inlined_call_operand.vmem [shape: f32[1,128], index: 4, kind: input, shape index: {}]   ;;  %s635_s5 = inlined_call_operand.hbm [shape: f32[16,128], index: 5, kind: output, shape index: {}]  }
   0x1   :  { %v29_v0 = vld [vmem:[%s631_s1] sm:$0xff]  ;;  %v30_v1 = vld [vmem:[%s631_s1 + $0x8] sm:$0xff]  ;;  %v31_v2 = vld [vmem:[%s631_s1 + $0x10] sm:$0xff] }
   0x2   :  { %v382_v3 = vpack.c.bf16 %v30_v1, %v29_v0  ;;  %v32_v4 = vld [vmem:[%s631_s1 + $0x18] sm:$0xff]  ;;  %v33_v6 = vld [vmem:[%s631_s1 + $0x20] sm:$0xff]  ;;  %v34_v7 = vld [vmem:[%s631_s1 + $0x28] sm:$0xff] }
   0x3   :  { %v386_v5 = vpack.c.bf16 %v32_v4, %v31_v2  ;;  %v390_v8 = vpack.c.bf16 %v34_v7, %v33_v6  ;;  %v35_v9 = vld [vmem:[%s631_s1 + $0x30] sm:$0xff]  ;;  %v36_v10 = vld [vmem:[%s631_s1 + $0x38] sm:$0xff]  ;;  %v27_v11 = vld [vmem:[%s630_s0] sm:$0xff] }
   0x4   :  { %383 = vmatprep.subr.bf16.mxu0 %v382_v3  ;;  %344 = vmatprep.mubr.f32.mxu0 %v27_v11  ;;  %v147_v12 = vld [vmem:[%s633_s3] sm:$0xff]  ;;  %v148_v13 = vld [vmem:[%s633_s3 + $0x8] sm:$0xff] }
   0x5   :  { %385 = vmatpush3.bf16.msra.mxu0 %v382_v3 }
   0x6   :  { %387 = vmatprep.subr.bf16.mxu0 %v386_v5 }
   0x7   :  { %10 = vsyncpa [#allocation4], 0  ;;  %v414_v14 = vpack.c.bf16 %v148_v13, %v147_v12  ;;  %v394_v15 = vpack.c.bf16 %v36_v10, %v35_v9  ;;  %v37_v16 = vld [vmem:[%s631_s1 + $0x40] sm:$0xff]  ;;  %v38_v17 = vld [vmem:[%s631_s1 + $0x48] sm:$0xff]  ;;  %s477_s11 = smov [#allocation3]  }
   0x8   :  { %v398_v18 = vpack.c.bf16 %v38_v17, %v37_v16  ;;  %v39_v19 = vld [vmem:[%s631_s1 + $0x50] sm:$0xff]  ;;  %v40_v20 = vld [vmem:[%s631_s1 + $0x58] sm:$0xff]  ;;  %v41_v22 = vld [vmem:[%s631_s1 + $0x60] sm:$0xff] }
   0x9   :  { %389 = vmatpush3.bf16.msra.mxu0 %v386_v5  ;;  %415 = vmatprep.subr.bf16.mxu1 %v414_v14  ;;  %v402_v21 = vpack.c.bf16 %v40_v20, %v39_v19  ;;  %v42_v23 = vld [vmem:[%s631_s1 + $0x68] sm:$0xff]  ;;  %v43_v25 = vld [vmem:[%s631_s1 + $0x70] sm:$0xff]  ;;  %v44_v26 = vld [vmem:[%s631_s1 + $0x78] sm:$0xff]  ;;  %s263_s1 = sshll.u32 %s477_s11, 4  ;;  %s264_s1 = int_to_ptr.vmem [resolvable:$true] %s263_s1 }
   0xa   :  { %391 = vmatprep.subr.bf16.mxu0 %v390_v8  ;;  %417 = vmatpush3.bf16.msra.mxu1 %v414_v14  ;;  %v406_v24 = vpack.c.bf16 %v42_v23, %v41_v22  ;;  %v410_v27 = vpack.c.bf16 %v44_v26, %v43_v25  ;;  %v28_v28 = vld [vmem:[%s630_s0 + $0x8] sm:$0xff]  ;;  %v149_v29 = vld [vmem:[%s633_s3 + $0x10] sm:$0xff]  ;;  %v150_v30 = vld [vmem:[%s633_s3 + $0x18] sm:$0xff]  ;;  %s453_s12 = scalar_lea.vmem %s264_s1, 256  ;;  %p458_p1 = scmp.lt.s32.totalorder %s264_s1, %s264_s1 }
   0xb   :  { %v418_v31 = vpack.c.bf16 %v150_v30, %v149_v29  ;;  %v151_v32 = vld [vmem:[%s633_s3 + $0x20] sm:$0xff]  ;;  %v152_v33 = vld [vmem:[%s633_s3 + $0x28] sm:$0xff]  ;;  %v153_v35 = vld [vmem:[%s633_s3 + $0x30] sm:$0xff]  ;;  %p454_p0 = scmp.ne.s32.totalorder %s264_s1, %s453_s12  ;;  %p459_p2 = scmp.lt.s32.totalorder %s453_s12, %s453_s12 }
   0xc   :  { %v422_v34 = vpack.c.bf16 %v152_v33, %v151_v32  ;;  %v154_v36 = vld [vmem:[%s633_s3 + $0x38] sm:$0xff]  ;;  %v155_v37 = vld [vmem:[%s633_s3 + $0x40] sm:$0xff]  ;;  %v156_v39 = vld [vmem:[%s633_s3 + $0x48] sm:$0xff] }
   0xd   :  { %393 = vmatpush3.bf16.msra.mxu0 %v390_v8  ;;  %419 = vmatprep.subr.bf16.mxu1 %v418_v31  ;;  %v426_v38 = vpack.c.bf16 %v154_v36, %v153_v35  ;;  %v430_v40 = vpack.c.bf16 %v156_v39, %v155_v37  ;;  %v157_v41 = vld [vmem:[%s633_s3 + $0x50] sm:$0xff]  ;;  %v158_v42 = vld [vmem:[%s633_s3 + $0x58] sm:$0xff]  ;;  %v159_v44 = vld [vmem:[%s633_s3 + $0x60] sm:$0xff]  ;;  %p460_p3 = por %p459_p2, %p458_p1 }
   0xe   :  { %395 = vmatprep.subr.bf16.mxu0 %v394_v15  ;;  %421 = vmatpush3.bf16.msra.mxu1 %v418_v31  ;;  %v434_v43 = vpack.c.bf16 %v158_v42, %v157_v41  ;;  %v160_v45 = vld [vmem:[%s633_s3 + $0x68] sm:$0xff]  ;;  %v161_v47 = vld [vmem:[%s633_s3 + $0x70] sm:$0xff]  ;;  %v162_v48 = vld [vmem:[%s633_s3 + $0x78] sm:$0xff] }
   0xf   :  { %423 = vmatprep.subr.bf16.mxu1 %v422_v34  ;;  %v438_v46 = vpack.c.bf16 %v160_v45, %v159_v44  ;;  %v442_v49 = vpack.c.bf16 %v162_v48, %v161_v47  ;;  %v274_v50 = vld [vmem:[%s632_s2] ss:$0 sm:$0xff]  ;;  %p461_p4 = pnand %p460_p3, %p454_p0 }
  0x10   :  { %v275_v9 = vld [vmem:[%s634_s4] ss:$0 sm:$0xff] }
  0x11   :  { %397 = vmatpush3.bf16.msra.mxu0 %v394_v15 }
  0x12   :  { %399 = vmatprep.subr.bf16.mxu0 %v398_v18  ;;  %425 = vmatpush3.bf16.msra.mxu1 %v422_v34 }
  0x13   :  { %427 = vmatprep.subr.bf16.mxu1 %v426_v38 }
  0x15   :  { %401 = vmatpush3.bf16.msra.mxu0 %v398_v18 }
  0x16   :  { %403 = vmatprep.subr.bf16.mxu0 %v402_v21  ;;  %429 = vmatpush3.bf16.msra.mxu1 %v426_v38 }
  0x17   :  { %431 = vmatprep.subr.bf16.mxu1 %v430_v40 }
  0x19   :  { %405 = vmatpush3.bf16.msra.mxu0 %v402_v21 }
  0x1a   :  { %407 = vmatprep.subr.bf16.mxu0 %v406_v24  ;;  %433 = vmatpush3.bf16.msra.mxu1 %v430_v40 }
  0x1b   :  { %435 = vmatprep.subr.bf16.mxu1 %v434_v43 }
  0x1d   :  { %409 = vmatpush3.bf16.msra.mxu0 %v406_v24 }
  0x1e   :  { %411 = vmatprep.subr.bf16.mxu0 %v410_v27  ;;  %437 = vmatpush3.bf16.msra.mxu1 %v434_v43 }
  0x1f   :  { %439 = vmatprep.subr.bf16.mxu1 %v438_v46 }
  0x21   :  { %413 = vmatpush3.bf16.msra.mxu0 %v410_v27 }
  0x22   :  { %441 = vmatpush3.bf16.msra.mxu1 %v438_v46 }
  0x23   :  { %443 = vmatprep.subr.bf16.mxu1 %v442_v49 }
  0x24   :  { %345 = vmatmul.mubr.f32.vlgmr.msra.gmra.mrb[0].mxu0 %v28_v28 }
  0x26   :  { %445 = vmatpush3.bf16.msra.mxu1 %v442_v49 }
  0xf7   :  { %v346_v51 = vpop.f32.mrb[0].mxu0 }
  0xf8   :  { %v124_v52 = vadd.f32 %v346_v51, %v274_v50  ;;  %v118_v53 = vpop.f32.mrb[1].mxu0 }
  0xf9   :  { %v119_v54 = vadd.f32 %v274_v50, %v118_v53 }
  0xfa   :  { %v130_v55 = vmul.f32 0.044715, %v124_v52  ;;  %v128_v6 = vmul.f32 0.5, %v124_v52 }
  0xfb   :  { %v129_v56 = vmul.f32 0.044715, %v119_v54  ;;  %v127_v4 = vmul.f32 0.5, %v119_v54 }
  0xfc   :  { %v132_v57 = vmul.f32 %v130_v55, %v124_v52 }
  0xfd   :  { %v131_v58 = vmul.f32 %v129_v56, %v119_v54 }
  0xfe   :  { %v134_v59 = vmul.f32 %v132_v57, %v124_v52 }
  0xff   :  { %v133_v60 = vmul.f32 %v131_v58, %v119_v54 }
 0x100   :  { %v136_v61 = vadd.f32 %v134_v59, %v124_v52 }
 0x101   :  { %v135_v62 = vadd.f32 %v133_v60, %v119_v54 }
 0x102   :  { %v138_v63 = vmul.f32 0.7978846, %v136_v61 }
 0x103   :  { %v137_v0 = vmul.f32 0.7978846, %v135_v62 }
 0x104   :  { %449 = vtanh.f32 %v138_v63 }
 0x105   :  { %451 = vtanh.f32 %v137_v0 }
 0x10e   :  { %v450_v1 = vpop.eup %449 }
 0x10f   :  { %v452_v2 = vpop.eup %451  ;;  %v142_v3 = vadd.f32 1.0, %v450_v1 }
 0x110   :  { %v141_v5 = vadd.f32 1.0, %v452_v2 }
 0x111   :  { %v144_v8 = vmul.f32 %v142_v3, %v128_v6 }
 0x112   :  { %v143_v7 = vmul.f32 %v141_v5, %v127_v4 }
 0x114   :  { %379 = vmatprep.mubr.f32.mxu1 %v143_v7 }
 0x115   :  { %380 = vmatmul.mubr.f32.vlgmr.msra.gmra.mrb[0].mxu1 %v144_v8 }
 0x1e8   :  { %v381_v10 = vpop.f32.mrb[0].mxu1 }
 0x1e9   :  { %v255_v11 = vadd.f32 %v381_v10, %v275_v9  ;;  %v229_v12 = vpop.f32.mrb[1].mxu1 }
 0x1ea   :  { %v254_v13 = vadd.f32 %v275_v9, %v229_v12 }
 0x1eb   :  { %257 = vst [vmem:[#allocation3 + $0x8] sm:$0xff] %v255_v11 }
 0x1ec   :  { %256 = vst [vmem:[#allocation3] sm:$0xff] %v254_v13 }
 0x1ed   :  { %464 = shalt.err (!%p461_p4)
}
 0x1ee   :  { %s465_s4 = scalar_lea.hbm %s635_s5, 256 }
 0x1ef   :  { %p466_p5 = scmp.ne.s32.totalorder %s635_s5, %s465_s4  ;;  %p469_p6 = scmp.lt.u32.totalorder %s465_s4, %s635_s5 }
 0x1f1   :  { %p471_p7 = pnand %p469_p6, %p466_p5 }
 0x1f3   :  { %474 = shalt.err (!%p471_p7)
}
 0x1f4   :  { %s478_s18 = smov 128   ;;  %s479_s19 = smov 8  }
 0x1f5   :  { %269 = dma.vmem_to_hbm [thread:$0]  %s264_s1, 256, %s635_s5, [#allocation4], %s478_s18, %s478_s18, %s479_s19  }
 0x1f6   :  { %475 = dma.done.wait [#allocation4], 256  }
 0x1f7   :  { %476 = vsyncadd [#allocation4], 4294967040 }
 0x1f8   :  { %273 = vsyncpa [#allocation4], 1 }

</bundles_post_ra>
